<compile_context>
chip_gen: v6e
topology: v6e:2x2x1
jax: 0.10.0
libtpu: 0.0.40
codegen_flags: <defaults>
</compile_context>

<pallas_src>
import numpy as np
import jax
import jax.numpy as jnp
from jax.experimental import pallas as pl
from jax.experimental.pallas import tpu as pltpu


def _make_lstm_kernel(T, Bp, I, H, Wl, offs):
    """Build the kernel closure over static layout constants.

    offs = (o_wih, o_whh, o_bias, o_wfc, o_bfc): sublane offsets of each
    section inside the packed weight slab (all 8-row aligned).
    """
    o_wih, o_whh, o_b, o_wfc, o_bfc = offs

    def kernel(x_ref, w_ref, out_ref):
        # Static sublane slices of the packed slab (free: no relayout).
        wih = w_ref[o_wih:o_wih + I, :]        # (I, Wl)  g-cols pre-scaled 2x
        whh = w_ref[o_whh:o_whh + H, :]        # (H, Wl)  g-cols pre-scaled 2x
        bias = w_ref[o_b:o_b + 1, :]           # (1, Wl)  fused b_ih+b_hh (2x on g)
        wfc = w_ref[o_wfc:o_wfc + H, :]        # (H, Wl)  cols >= O are zero
        bfc = w_ref[o_bfc:o_bfc + 1, :]        # (1, Wl)

        # ---- One big input projection for ALL timesteps (single MXU matmul).
        # (T, Bp, I) -> (T*Bp, I): Bp is a multiple of 8, pure layout no-op.
        x_all = x_ref[...].reshape(T * Bp, I)
        xp_all = (jnp.dot(x_all, wih, preferred_element_type=jnp.float32)
                  + bias)                       # (T*Bp, Wl), vreg-resident

        # ---- Fully unrolled recurrence; h/c carried as values. ----
        h = jnp.zeros((Bp, H), jnp.float32)
        c = jnp.zeros((Bp, H), jnp.float32)
        for t in range(T):                      # T small & static
            xp_t = xp_all[t * Bp:(t + 1) * Bp, :]            # static slice
            z = xp_t + jnp.dot(h, whh,
                               preferred_element_type=jnp.float32)  # (Bp, Wl)
            sz = jax.nn.sigmoid(z)              # single full-width EUP op
            i_g = sz[:, 0 * H:1 * H]
            f_g = sz[:, 1 * H:2 * H]
            g_g = 2.0 * sz[:, 2 * H:3 * H] - 1.0   # == tanh(pre_g)
            o_g = sz[:, 3 * H:4 * H]
            c = f_g * c + i_g * g_g
            h = o_g * jnp.tanh(c)

        # ---- Final Linear + Sigmoid on the last hidden state. ----
        # wfc is zero-padded to Wl lanes -> unmasked lane-dense store.
        logits = (jnp.dot(h, wfc, preferred_element_type=jnp.float32) + bfc)
        out_ref[...] = jax.nn.sigmoid(logits).astype(out_ref.dtype)

    return kernel


def port_state_lstm(x_btI, w_ih, w_hh, b_ih, b_hh, w_fc, b_fc):
    """x_btI: (B, T, I) float32 (PyTorch batch_first convention).
    w_ih: (4H, I), w_hh: (4H, H), b_ih/b_hh: (4H,), w_fc: (O, H), b_fc: (O,).
    Returns (B, O) = sigmoid(Linear(LSTM(x)[:, -1, :]))."""
    B, T, I = x_btI.shape
    H = w_hh.shape[1]
    O = w_fc.shape[0]

    Bp = max(8, ((B + 7) // 8) * 8)                      # sublane-pad batch
    Wl = ((max(4 * H, O) + 127) // 128) * 128            # lane-pad slab / FC out

    # Time-major + batch pad (padded rows sliced off below).
    # TODO(synk): at scaled T*B read the batch-major array directly via a
    # time-chunk BlockSpec grid instead of this wrapper transpose.
    x_tbI = jnp.transpose(x_btI, (1, 0, 2))              # (T, B, I)
    if Bp != B:
        x_tbI = jnp.pad(x_tbI, ((0, 0), (0, Bp - B), (0, 0)))

    # tanh(x) = 2*sigmoid(2x) - 1: bake a 2x scale into the g-gate columns so
    # the kernel needs only one full-width sigmoid per step.
    gscale = jnp.ones((4 * H,), jnp.float32).at[2 * H:3 * H].set(2.0)
    wih_t = w_ih.T.astype(jnp.float32) * gscale          # (I, 4H)
    whh_t = w_hh.T.astype(jnp.float32) * gscale          # (H, 4H)
    bias = ((b_ih + b_hh).astype(jnp.float32) * gscale).reshape(1, 4 * H)
    wfc_t = w_fc.T.astype(jnp.float32)                   # (H, O)
    bfc = b_fc.astype(jnp.float32).reshape(1, O)

    # Pack everything into one lane-aligned slab -> 2 input DMAs total.
    def rpad(n):  # round rows up to the 8-sublane width
        return ((n + 7) // 8) * 8

    o_wih = 0
    o_whh = o_wih + rpad(I)
    o_b = o_whh + rpad(H)
    o_wfc = o_b + rpad(1)
    o_bfc = o_wfc + rpad(H)
    rows = o_bfc + rpad(1)

    slab = jnp.zeros((rows, Wl), jnp.float32)
    slab = slab.at[o_wih:o_wih + I, :4 * H].set(wih_t)
    slab = slab.at[o_whh:o_whh + H, :4 * H].set(whh_t)
    slab = slab.at[o_b:o_b + 1, :4 * H].set(bias)
    slab = slab.at[o_wfc:o_wfc + H, :O].set(wfc_t)
    slab = slab.at[o_bfc:o_bfc + 1, :O].set(bfc)

    vmem = pl.BlockSpec(memory_space=pltpu.MemorySpace.VMEM)
    out = pl.pallas_call(
        _make_lstm_kernel(T, Bp, I, H, Wl, (o_wih, o_whh, o_b, o_wfc, o_bfc)),
        out_shape=jax.ShapeDtypeStruct((Bp, Wl), jnp.float32),
        in_specs=[vmem, vmem],
        out_specs=vmem,
    )(x_tbI, slab)
    return out[:B, :O]


def _reference(x_btI, w_ih, w_hh, b_ih, b_hh, w_fc, b_fc):
    """Pure-JAX reference matching torch.nn.LSTM(batch_first=True) + fc + sigmoid."""
    B, T, I = x_btI.shape
    H = w_hh.shape[1]
    h = jnp.zeros((B, H), jnp.float32)
    c = jnp.zeros((B, H), jnp.float32)
    for t in range(T):
        z = x_btI[:, t, :] @ w_ih.T + h @ w_hh.T + b_ih + b_hh
        i_g = jax.nn.sigmoid(z[:, 0 * H:1 * H])
        f_g = jax.nn.sigmoid(z[:, 1 * H:2 * H])
        g_g = jnp.tanh(z[:, 2 * H:3 * H])
        o_g = jax.nn.sigmoid(z[:, 3 * H:4 * H])
        c = f_g * c + i_g * g_g
        h = o_g * jnp.tanh(c)
    return jax.nn.sigmoid(h @ w_fc.T + b_fc)


if __name__ == "__main__":
    # Small shapes consistent with the module: PortStateLSTM(input_size=16,
    # hidden_size=32, output_size=4), batch=2, seq=8.
    B, T, I, H, O = 2, 8, 16, 32, 4

    key = jax.random.PRNGKey(0)
    ks = jax.random.split(key, 8)
    bound = 1.0 / np.sqrt(H)   # PyTorch default init range U(-1/sqrt(H), 1/sqrt(H))

    x = jax.random.normal(ks[0], (B, T, I), dtype=jnp.float32)
    w_ih = jax.random.uniform(ks[1], (4 * H, I), jnp.float32, -bound, bound)
    w_hh = jax.random.uniform(ks[2], (4 * H, H), jnp.float32, -bound, bound)
    b_ih = jax.random.uniform(ks[3], (4 * H,), jnp.float32, -bound, bound)
    b_hh = jax.random.uniform(ks[4], (4 * H,), jnp.float32, -bound, bound)
    w_fc = jax.random.uniform(ks[5], (O, H), jnp.float32, -bound, bound)
    b_fc = jax.random.uniform(ks[6], (O,), jnp.float32, -bound, bound)

    out = port_state_lstm(x, w_ih, w_hh, b_ih, b_hh, w_fc, b_fc)
    out = jax.block_until_ready(out)

    ref = _reference(x, w_ih, w_hh, b_ih, b_hh, w_fc, b_fc)
    np.testing.assert_allclose(np.asarray(out), np.asarray(ref),
                               rtol=1e-5, atol=1e-5)
    print("KERNEL_OK")
</pallas_src>

<mosaic_0001>
module attributes {stable_mosaic.version = 11 : i64} {
  func.func @kernel(%arg0: memref<8x8x16xf32, #tpu.memory_space<vmem>>, %arg1: memref<96x128xf32, #tpu.memory_space<vmem>>, %arg2: memref<8x128xf32, #tpu.memory_space<vmem>>) attributes {dimension_semantics = [], scalar_prefetch = 0 : i64, scratch_operands = 0 : i64, tpu.core_type = #tpu.core_type<tc>} {
    %c0 = arith.constant 0 : index
    %c0_0 = arith.constant 0 : index
    %0 = vector.load %arg1[%c0, %c0_0] : memref<96x128xf32, #tpu.memory_space<vmem>>, vector<16x128xf32>
    %c16 = arith.constant 16 : index
    %c0_1 = arith.constant 0 : index
    %1 = vector.load %arg1[%c16, %c0_1] : memref<96x128xf32, #tpu.memory_space<vmem>>, vector<32x128xf32>
    %c48 = arith.constant 48 : index
    %c0_2 = arith.constant 0 : index
    %2 = vector.load %arg1[%c48, %c0_2] : memref<96x128xf32, #tpu.memory_space<vmem>>, vector<1x128xf32>
    %c56 = arith.constant 56 : index
    %c0_3 = arith.constant 0 : index
    %3 = vector.load %arg1[%c56, %c0_3] : memref<96x128xf32, #tpu.memory_space<vmem>>, vector<32x128xf32>
    %c88 = arith.constant 88 : index
    %c0_4 = arith.constant 0 : index
    %4 = vector.load %arg1[%c88, %c0_4] : memref<96x128xf32, #tpu.memory_space<vmem>>, vector<1x128xf32>
    %c0_5 = arith.constant 0 : index
    %c0_6 = arith.constant 0 : index
    %c0_7 = arith.constant 0 : index
    %5 = vector.load %arg0[%c0_5, %c0_6, %c0_7] : memref<8x8x16xf32, #tpu.memory_space<vmem>>, vector<8x8x16xf32>
    %6 = vector.shape_cast %5 : vector<8x8x16xf32> to vector<64x16xf32>
    %cst = arith.constant dense<0.000000e+00> : vector<64x128xf32>
    %7 = tpu.matmul %6, %0, %cst {dimension_numbers = #tpu.dot_dimension_numbers<[1], [0], [0], [1], [0, 0, 1, 1], [], []>} : vector<64x16xf32>, vector<16x128xf32>, vector<64x128xf32> -> vector<64x128xf32>
    %8 = vector.broadcast %2 : vector<1x128xf32> to vector<64x128xf32>
    %9 = arith.addf %7, %8 : vector<64x128xf32>
    %cst_8 = arith.constant 0.000000e+00 : f32
    %10 = vector.broadcast %cst_8 : f32 to vector<8x32xf32>
    %cst_9 = arith.constant 0.000000e+00 : f32
    %11 = vector.broadcast %cst_9 : f32 to vector<8x32xf32>
    %12 = vector.extract_strided_slice %9 {offsets = [0, 0], sizes = [8, 128], strides = [1, 1]} : vector<64x128xf32> to vector<8x128xf32>
    %cst_10 = arith.constant dense<0.000000e+00> : vector<8x128xf32>
    %13 = tpu.matmul %10, %1, %cst_10 {dimension_numbers = #tpu.dot_dimension_numbers<[1], [0], [0], [1], [0, 0, 1, 1], [], []>} : vector<8x32xf32>, vector<32x128xf32>, vector<8x128xf32> -> vector<8x128xf32>
    %14 = arith.addf %12, %13 : vector<8x128xf32>
    %15 = arith.negf %14 : vector<8x128xf32>
    %16 = math.exp %15 : vector<8x128xf32>
    %cst_11 = arith.constant 1.000000e+00 : f32
    %17 = vector.broadcast %cst_11 : f32 to vector<8x128xf32>
    %18 = arith.addf %17, %16 : vector<8x128xf32>
    %19 = arith.divf %17, %18 : vector<8x128xf32>
    %20 = vector.extract_strided_slice %19 {offsets = [0, 0], sizes = [8, 32], strides = [1, 1]} : vector<8x128xf32> to vector<8x32xf32>
    %21 = vector.extract_strided_slice %19 {offsets = [0, 32], sizes = [8, 32], strides = [1, 1]} : vector<8x128xf32> to vector<8x32xf32>
    %22 = vector.extract_strided_slice %19 {offsets = [0, 64], sizes = [8, 32], strides = [1, 1]} : vector<8x128xf32> to vector<8x32xf32>
    %cst_12 = arith.constant 2.000000e+00 : f32
    %23 = vector.broadcast %cst_12 : f32 to vector<8x32xf32>
    %24 = arith.mulf %23, %22 : vector<8x32xf32>
    %cst_13 = arith.constant 1.000000e+00 : f32
    %25 = vector.broadcast %cst_13 : f32 to vector<8x32xf32>
    %26 = arith.subf %24, %25 : vector<8x32xf32>
    %27 = vector.extract_strided_slice %19 {offsets = [0, 96], sizes = [8, 32], strides = [1, 1]} : vector<8x128xf32> to vector<8x32xf32>
    %28 = arith.mulf %21, %11 : vector<8x32xf32>
    %29 = arith.mulf %20, %26 : vector<8x32xf32>
    %30 = arith.addf %28, %29 : vector<8x32xf32>
    %31 = math.tanh %30 : vector<8x32xf32>
    %32 = arith.mulf %27, %31 : vector<8x32xf32>
    %33 = vector.extract_strided_slice %9 {offsets = [8, 0], sizes = [8, 128], strides = [1, 1]} : vector<64x128xf32> to vector<8x128xf32>
    %cst_14 = arith.constant dense<0.000000e+00> : vector<8x128xf32>
    %34 = tpu.matmul %32, %1, %cst_14 {dimension_numbers = #tpu.dot_dimension_numbers<[1], [0], [0], [1], [0, 0, 1, 1], [], []>} : vector<8x32xf32>, vector<32x128xf32>, vector<8x128xf32> -> vector<8x128xf32>
    %35 = arith.addf %33, %34 : vector<8x128xf32>
    %36 = arith.negf %35 : vector<8x128xf32>
    %37 = math.exp %36 : vector<8x128xf32>
    %cst_15 = arith.constant 1.000000e+00 : f32
    %38 = vector.broadcast %cst_15 : f32 to vector<8x128xf32>
    %39 = arith.addf %38, %37 : vector<8x128xf32>
    %40 = arith.divf %38, %39 : vector<8x128xf32>
    %41 = vector.extract_strided_slice %40 {offsets = [0, 0], sizes = [8, 32], strides = [1, 1]} : vector<8x128xf32> to vector<8x32xf32>
    %42 = vector.extract_strided_slice %40 {offsets = [0, 32], sizes = [8, 32], strides = [1, 1]} : vector<8x128xf32> to vector<8x32xf32>
    %43 = vector.extract_strided_slice %40 {offsets = [0, 64], sizes = [8, 32], strides = [1, 1]} : vector<8x128xf32> to vector<8x32xf32>
    %cst_16 = arith.constant 2.000000e+00 : f32
    %44 = vector.broadcast %cst_16 : f32 to vector<8x32xf32>
    %45 = arith.mulf %44, %43 : vector<8x32xf32>
    %cst_17 = arith.constant 1.000000e+00 : f32
    %46 = vector.broadcast %cst_17 : f32 to vector<8x32xf32>
    %47 = arith.subf %45, %46 : vector<8x32xf32>
    %48 = vector.extract_strided_slice %40 {offsets = [0, 96], sizes = [8, 32], strides = [1, 1]} : vector<8x128xf32> to vector<8x32xf32>
    %49 = arith.mulf %42, %30 : vector<8x32xf32>
    %50 = arith.mulf %41, %47 : vector<8x32xf32>
    %51 = arith.addf %49, %50 : vector<8x32xf32>
    %52 = math.tanh %51 : vector<8x32xf32>
    %53 = arith.mulf %48, %52 : vector<8x32xf32>
    %54 = vector.extract_strided_slice %9 {offsets = [16, 0], sizes = [8, 128], strides = [1, 1]} : vector<64x128xf32> to vector<8x128xf32>
    %cst_18 = arith.constant dense<0.000000e+00> : vector<8x128xf32>
    %55 = tpu.matmul %53, %1, %cst_18 {dimension_numbers = #tpu.dot_dimension_numbers<[1], [0], [0], [1], [0, 0, 1, 1], [], []>} : vector<8x32xf32>, vector<32x128xf32>, vector<8x128xf32> -> vector<8x128xf32>
    %56 = arith.addf %54, %55 : vector<8x128xf32>
    %57 = arith.negf %56 : vector<8x128xf32>
    %58 = math.exp %57 : vector<8x128xf32>
    %cst_19 = arith.constant 1.000000e+00 : f32
    %59 = vector.broadcast %cst_19 : f32 to vector<8x128xf32>
    %60 = arith.addf %59, %58 : vector<8x128xf32>
    %61 = arith.divf %59, %60 : vector<8x128xf32>
    %62 = vector.extract_strided_slice %61 {offsets = [0, 0], sizes = [8, 32], strides = [1, 1]} : vector<8x128xf32> to vector<8x32xf32>
    %63 = vector.extract_strided_slice %61 {offsets = [0, 32], sizes = [8, 32], strides = [1, 1]} : vector<8x128xf32> to vector<8x32xf32>
    %64 = vector.extract_strided_slice %61 {offsets = [0, 64], sizes = [8, 32], strides = [1, 1]} : vector<8x128xf32> to vector<8x32xf32>
    %cst_20 = arith.constant 2.000000e+00 : f32
    %65 = vector.broadcast %cst_20 : f32 to vector<8x32xf32>
    %66 = arith.mulf %65, %64 : vector<8x32xf32>
    %cst_21 = arith.constant 1.000000e+00 : f32
    %67 = vector.broadcast %cst_21 : f32 to vector<8x32xf32>
    %68 = arith.subf %66, %67 : vector<8x32xf32>
    %69 = vector.extract_strided_slice %61 {offsets = [0, 96], sizes = [8, 32], strides = [1, 1]} : vector<8x128xf32> to vector<8x32xf32>
    %70 = arith.mulf %63, %51 : vector<8x32xf32>
    %71 = arith.mulf %62, %68 : vector<8x32xf32>
    %72 = arith.addf %70, %71 : vector<8x32xf32>
    %73 = math.tanh %72 : vector<8x32xf32>
    %74 = arith.mulf %69, %73 : vector<8x32xf32>
    %75 = vector.extract_strided_slice %9 {offsets = [24, 0], sizes = [8, 128], strides = [1, 1]} : vector<64x128xf32> to vector<8x128xf32>
    %cst_22 = arith.constant dense<0.000000e+00> : vector<8x128xf32>
    %76 = tpu.matmul %74, %1, %cst_22 {dimension_numbers = #tpu.dot_dimension_numbers<[1], [0], [0], [1], [0, 0, 1, 1], [], []>} : vector<8x32xf32>, vector<32x128xf32>, vector<8x128xf32> -> vector<8x128xf32>
    %77 = arith.addf %75, %76 : vector<8x128xf32>
    %78 = arith.negf %77 : vector<8x128xf32>
    %79 = math.exp %78 : vector<8x128xf32>
    %cst_23 = arith.constant 1.000000e+00 : f32
    %80 = vector.broadcast %cst_23 : f32 to vector<8x128xf32>
    %81 = arith.addf %80, %79 : vector<8x128xf32>
    %82 = arith.divf %80, %81 : vector<8x128xf32>
    %83 = vector.extract_strided_slice %82 {offsets = [0, 0], sizes = [8, 32], strides = [1, 1]} : vector<8x128xf32> to vector<8x32xf32>
    %84 = vector.extract_strided_slice %82 {offsets = [0, 32], sizes = [8, 32], strides = [1, 1]} : vector<8x128xf32> to vector<8x32xf32>
    %85 = vector.extract_strided_slice %82 {offsets = [0, 64], sizes = [8, 32], strides = [1, 1]} : vector<8x128xf32> to vector<8x32xf32>
    %cst_24 = arith.constant 2.000000e+00 : f32
    %86 = vector.broadcast %cst_24 : f32 to vector<8x32xf32>
    %87 = arith.mulf %86, %85 : vector<8x32xf32>
    %cst_25 = arith.constant 1.000000e+00 : f32
    %88 = vector.broadcast %cst_25 : f32 to vector<8x32xf32>
    %89 = arith.subf %87, %88 : vector<8x32xf32>
    %90 = vector.extract_strided_slice %82 {offsets = [0, 96], sizes = [8, 32], strides = [1, 1]} : vector<8x128xf32> to vector<8x32xf32>
    %91 = arith.mulf %84, %72 : vector<8x32xf32>
    %92 = arith.mulf %83, %89 : vector<8x32xf32>
    %93 = arith.addf %91, %92 : vector<8x32xf32>
    %94 = math.tanh %93 : vector<8x32xf32>
    %95 = arith.mulf %90, %94 : vector<8x32xf32>
    %96 = vector.extract_strided_slice %9 {offsets = [32, 0], sizes = [8, 128], strides = [1, 1]} : vector<64x128xf32> to vector<8x128xf32>
    %cst_26 = arith.constant dense<0.000000e+00> : vector<8x128xf32>
    %97 = tpu.matmul %95, %1, %cst_26 {dimension_numbers = #tpu.dot_dimension_numbers<[1], [0], [0], [1], [0, 0, 1, 1], [], []>} : vector<8x32xf32>, vector<32x128xf32>, vector<8x128xf32> -> vector<8x128xf32>
    %98 = arith.addf %96, %97 : vector<8x128xf32>
    %99 = arith.negf %98 : vector<8x128xf32>
    %100 = math.exp %99 : vector<8x128xf32>
    %cst_27 = arith.constant 1.000000e+00 : f32
    %101 = vector.broadcast %cst_27 : f32 to vector<8x128xf32>
    %102 = arith.addf %101, %100 : vector<8x128xf32>
    %103 = arith.divf %101, %102 : vector<8x128xf32>
    %104 = vector.extract_strided_slice %103 {offsets = [0, 0], sizes = [8, 32], strides = [1, 1]} : vector<8x128xf32> to vector<8x32xf32>
    %105 = vector.extract_strided_slice %103 {offsets = [0, 32], sizes = [8, 32], strides = [1, 1]} : vector<8x128xf32> to vector<8x32xf32>
    %106 = vector.extract_strided_slice %103 {offsets = [0, 64], sizes = [8, 32], strides = [1, 1]} : vector<8x128xf32> to vector<8x32xf32>
    %cst_28 = arith.constant 2.000000e+00 : f32
    %107 = vector.broadcast %cst_28 : f32 to vector<8x32xf32>
    %108 = arith.mulf %107, %106 : vector<8x32xf32>
    %cst_29 = arith.constant 1.000000e+00 : f32
    %109 = vector.broadcast %cst_29 : f32 to vector<8x32xf32>
    %110 = arith.subf %108, %109 : vector<8x32xf32>
    %111 = vector.extract_strided_slice %103 {offsets = [0, 96], sizes = [8, 32], strides = [1, 1]} : vector<8x128xf32> to vector<8x32xf32>
    %112 = arith.mulf %105, %93 : vector<8x32xf32>
    %113 = arith.mulf %104, %110 : vector<8x32xf32>
    %114 = arith.addf %112, %113 : vector<8x32xf32>
    %115 = math.tanh %114 : vector<8x32xf32>
    %116 = arith.mulf %111, %115 : vector<8x32xf32>
    %117 = vector.extract_strided_slice %9 {offsets = [40, 0], sizes = [8, 128], strides = [1, 1]} : vector<64x128xf32> to vector<8x128xf32>
    %cst_30 = arith.constant dense<0.000000e+00> : vector<8x128xf32>
    %118 = tpu.matmul %116, %1, %cst_30 {dimension_numbers = #tpu.dot_dimension_numbers<[1], [0], [0], [1], [0, 0, 1, 1], [], []>} : vector<8x32xf32>, vector<32x128xf32>, vector<8x128xf32> -> vector<8x128xf32>
    %119 = arith.addf %117, %118 : vector<8x128xf32>
    %120 = arith.negf %119 : vector<8x128xf32>
    %121 = math.exp %120 : vector<8x128xf32>
    %cst_31 = arith.constant 1.000000e+00 : f32
    %122 = vector.broadcast %cst_31 : f32 to vector<8x128xf32>
    %123 = arith.addf %122, %121 : vector<8x128xf32>
    %124 = arith.divf %122, %123 : vector<8x128xf32>
    %125 = vector.extract_strided_slice %124 {offsets = [0, 0], sizes = [8, 32], strides = [1, 1]} : vector<8x128xf32> to vector<8x32xf32>
    %126 = vector.extract_strided_slice %124 {offsets = [0, 32], sizes = [8, 32], strides = [1, 1]} : vector<8x128xf32> to vector<8x32xf32>
    %127 = vector.extract_strided_slice %124 {offsets = [0, 64], sizes = [8, 32], strides = [1, 1]} : vector<8x128xf32> to vector<8x32xf32>
    %cst_32 = arith.constant 2.000000e+00 : f32
    %128 = vector.broadcast %cst_32 : f32 to vector<8x32xf32>
    %129 = arith.mulf %128, %127 : vector<8x32xf32>
    %cst_33 = arith.constant 1.000000e+00 : f32
    %130 = vector.broadcast %cst_33 : f32 to vector<8x32xf32>
    %131 = arith.subf %129, %130 : vector<8x32xf32>
    %132 = vector.extract_strided_slice %124 {offsets = [0, 96], sizes = [8, 32], strides = [1, 1]} : vector<8x128xf32> to vector<8x32xf32>
    %133 = arith.mulf %126, %114 : vector<8x32xf32>
    %134 = arith.mulf %125, %131 : vector<8x32xf32>
    %135 = arith.addf %133, %134 : vector<8x32xf32>
    %136 = math.tanh %135 : vector<8x32xf32>
    %137 = arith.mulf %132, %136 : vector<8x32xf32>
    %138 = vector.extract_strided_slice %9 {offsets = [48, 0], sizes = [8, 128], strides = [1, 1]} : vector<64x128xf32> to vector<8x128xf32>
    %cst_34 = arith.constant dense<0.000000e+00> : vector<8x128xf32>
    %139 = tpu.matmul %137, %1, %cst_34 {dimension_numbers = #tpu.dot_dimension_numbers<[1], [0], [0], [1], [0, 0, 1, 1], [], []>} : vector<8x32xf32>, vector<32x128xf32>, vector<8x128xf32> -> vector<8x128xf32>
    %140 = arith.addf %138, %139 : vector<8x128xf32>
    %141 = arith.negf %140 : vector<8x128xf32>
    %142 = math.exp %141 : vector<8x128xf32>
    %cst_35 = arith.constant 1.000000e+00 : f32
    %143 = vector.broadcast %cst_35 : f32 to vector<8x128xf32>
    %144 = arith.addf %143, %142 : vector<8x128xf32>
    %145 = arith.divf %143, %144 : vector<8x128xf32>
    %146 = vector.extract_strided_slice %145 {offsets = [0, 0], sizes = [8, 32], strides = [1, 1]} : vector<8x128xf32> to vector<8x32xf32>
    %147 = vector.extract_strided_slice %145 {offsets = [0, 32], sizes = [8, 32], strides = [1, 1]} : vector<8x128xf32> to vector<8x32xf32>
    %148 = vector.extract_strided_slice %145 {offsets = [0, 64], sizes = [8, 32], strides = [1, 1]} : vector<8x128xf32> to vector<8x32xf32>
    %cst_36 = arith.constant 2.000000e+00 : f32
    %149 = vector.broadcast %cst_36 : f32 to vector<8x32xf32>
    %150 = arith.mulf %149, %148 : vector<8x32xf32>
    %cst_37 = arith.constant 1.000000e+00 : f32
    %151 = vector.broadcast %cst_37 : f32 to vector<8x32xf32>
    %152 = arith.subf %150, %151 : vector<8x32xf32>
    %153 = vector.extract_strided_slice %145 {offsets = [0, 96], sizes = [8, 32], strides = [1, 1]} : vector<8x128xf32> to vector<8x32xf32>
    %154 = arith.mulf %147, %135 : vector<8x32xf32>
    %155 = arith.mulf %146, %152 : vector<8x32xf32>
    %156 = arith.addf %154, %155 : vector<8x32xf32>
    %157 = math.tanh %156 : vector<8x32xf32>
    %158 = arith.mulf %153, %157 : vector<8x32xf32>
    %159 = vector.extract_strided_slice %9 {offsets = [56, 0], sizes = [8, 128], strides = [1, 1]} : vector<64x128xf32> to vector<8x128xf32>
    %cst_38 = arith.constant dense<0.000000e+00> : vector<8x128xf32>
    %160 = tpu.matmul %158, %1, %cst_38 {dimension_numbers = #tpu.dot_dimension_numbers<[1], [0], [0], [1], [0, 0, 1, 1], [], []>} : vector<8x32xf32>, vector<32x128xf32>, vector<8x128xf32> -> vector<8x128xf32>
    %161 = arith.addf %159, %160 : vector<8x128xf32>
    %162 = arith.negf %161 : vector<8x128xf32>
    %163 = math.exp %162 : vector<8x128xf32>
    %cst_39 = arith.constant 1.000000e+00 : f32
    %164 = vector.broadcast %cst_39 : f32 to vector<8x128xf32>
    %165 = arith.addf %164, %163 : vector<8x128xf32>
    %166 = arith.divf %164, %165 : vector<8x128xf32>
    %167 = vector.extract_strided_slice %166 {offsets = [0, 0], sizes = [8, 32], strides = [1, 1]} : vector<8x128xf32> to vector<8x32xf32>
    %168 = vector.extract_strided_slice %166 {offsets = [0, 32], sizes = [8, 32], strides = [1, 1]} : vector<8x128xf32> to vector<8x32xf32>
    %169 = vector.extract_strided_slice %166 {offsets = [0, 64], sizes = [8, 32], strides = [1, 1]} : vector<8x128xf32> to vector<8x32xf32>
    %cst_40 = arith.constant 2.000000e+00 : f32
    %170 = vector.broadcast %cst_40 : f32 to vector<8x32xf32>
    %171 = arith.mulf %170, %169 : vector<8x32xf32>
    %cst_41 = arith.constant 1.000000e+00 : f32
    %172 = vector.broadcast %cst_41 : f32 to vector<8x32xf32>
    %173 = arith.subf %171, %172 : vector<8x32xf32>
    %174 = vector.extract_strided_slice %166 {offsets = [0, 96], sizes = [8, 32], strides = [1, 1]} : vector<8x128xf32> to vector<8x32xf32>
    %175 = arith.mulf %168, %156 : vector<8x32xf32>
    %176 = arith.mulf %167, %173 : vector<8x32xf32>
    %177 = arith.addf %175, %176 : vector<8x32xf32>
    %178 = math.tanh %177 : vector<8x32xf32>
    %179 = arith.mulf %174, %178 : vector<8x32xf32>
    %cst_42 = arith.constant dense<0.000000e+00> : vector<8x128xf32>
    %180 = tpu.matmul %179, %3, %cst_42 {dimension_numbers = #tpu.dot_dimension_numbers<[1], [0], [0], [1], [0, 0, 1, 1], [], []>} : vector<8x32xf32>, vector<32x128xf32>, vector<8x128xf32> -> vector<8x128xf32>
    %181 = vector.broadcast %4 : vector<1x128xf32> to vector<8x128xf32>
    %182 = arith.addf %180, %181 : vector<8x128xf32>
    %183 = arith.negf %182 : vector<8x128xf32>
    %184 = math.exp %183 : vector<8x128xf32>
    %cst_43 = arith.constant 1.000000e+00 : f32
    %185 = vector.broadcast %cst_43 : f32 to vector<8x128xf32>
    %186 = arith.addf %185, %184 : vector<8x128xf32>
    %187 = arith.divf %185, %186 : vector<8x128xf32>
    %c0_44 = arith.constant 0 : index
    %c0_45 = arith.constant 0 : index
    %188 = vector.load %arg2[%c0_44, %c0_45] : memref<8x128xf32, #tpu.memory_space<vmem>>, vector<8x128xf32>
    tpu.vector_store %arg2[%c0_44, %c0_45], %187 {strides = array<i32>} : memref<8x128xf32, #tpu.memory_space<vmem>>, vector<8x128xf32>,
    return
  }
}

</mosaic_0001>

<bundles_post_ra>
// kernel: tpu_custom_call.1
= control target key start
LH: loop header
LB: loop body
LE: loop exit
PB: predicated region body
PF: predicated region fallthrough
CT: control target
= control target key end

     0   :  { %7 = vsyncpa [#allocation3], 0  ;;  %s1633_s0 = inlined_call_operand.hbm [shape: f32[8,8,16], index: 0, kind: input, shape index: {}]   ;;  %s1634_s1 = inlined_call_operand.hbm [shape: f32[96,128], index: 1, kind: input, shape index: {}]   ;;  %s1635_s2 = inlined_call_operand.hbm [shape: f32[8,128], index: 2, kind: output, shape index: {}]  }
   0x1   :  { %8 = vsyncpa [#allocation6], 0 }
   0x2   :  { %9 = vsyncpa [#allocation4], 0  ;;  %s1435_s9 = smov [#allocation2]  }
   0x3   :  { %s15_s10 = sshll.u32 %s1435_s9, 4  ;;  %s16_s10 = int_to_ptr.vmem [resolvable:$true] %s15_s10 }
   0x4   :  { %s1377_s11 = scalar_lea.vmem %s16_s10, 1024  ;;  %p1382_p1 = scmp.lt.s32.totalorder %s16_s10, %s16_s10 }
   0x5   :  { %p1378_p0 = scmp.ne.s32.totalorder %s16_s10, %s1377_s11  ;;  %p1383_p2 = scmp.lt.s32.totalorder %s1377_s11, %s1377_s11 }
   0x7   :  { %p1384_p3 = por %p1383_p2, %p1382_p1 }
   0x9   :  { %p1385_p4 = pnand %p1384_p3, %p1378_p0 }
   0xb   :  { %1388 = shalt.err (!%p1385_p4)
}
   0xc   :  { %s1436_s12 = smov 128   ;;  %s1437_s13 = smov 8  }
   0xd   :  { %21 = dma.hbm_to_vmem [thread:$0]  %s1633_s0, 1024, %s16_s10, [#allocation3], %s1436_s12, %s1436_s12, %s1437_s13  }
   0xe   :  { %s1438_s16 = smov [#allocation5]  }
   0xf   :  { %s27_s17 = sshll.u32 %s1438_s16, 4  ;;  %s28_s17 = int_to_ptr.vmem [resolvable:$true] %s27_s17 }
  0x10   :  { %s1397_s18 = scalar_lea.vmem %s28_s17, 1536  ;;  %p1402_p6 = scmp.lt.s32.totalorder %s28_s17, %s28_s17 }
  0x11   :  { %p1398_p5 = scmp.ne.s32.totalorder %s28_s17, %s1397_s18  ;;  %p1403_p7 = scmp.lt.s32.totalorder %s1397_s18, %s1397_s18 }
  0x13   :  { %p1404_p8 = por %p1403_p7, %p1402_p6 }
  0x15   :  { %p1405_p9 = pnand %p1404_p8, %p1398_p5 }
  0x17   :  { %1408 = shalt.err (!%p1405_p9)
}
  0x18   :  { %33 = dma.hbm_to_vmem [thread:$0]  %s1634_s1, 1536, %s28_s17, [#allocation6], %s1436_s12, %s1436_s12, %s1437_s13  }
  0x19   :  { %1429 = dma.done.wait [#allocation3], 1024  }
  0x1a   :  { %1430 = vsyncadd [#allocation3], 4294966272 }
  0x1b   :  { %1431 = dma.done.wait [#allocation6], 1536  }
  0x1c   :  { %1432 = vsyncadd [#allocation6], 4294965760  ;;  %v1439_v0 = vmov 0.0   ;;  %vm1440_vm0 = vmmov 0   ;;  %v41_v1 = vld [vmem:[#allocation5 + $0x8] sm:$0xff]  ;;  %v40_v3 = vld [vmem:[#allocation5] sm:$0xff] }
  0x1d   :  { %1209 = vmatprep.subr.mxu1 %v1439_v0  ;;  %1217 = vmatprep.mubr.msk.f32.mxu1 %vm1440_vm0, %v1439_v0  ;;  %v1468_v2 = vld [vmem:[#allocation5 + $0x28] sm:$0xff]  ;;  %v1471_v4 = vld [vmem:[#allocation5 + $0x20] sm:$0xff]  ;;  %vm64_vm1 = vcmask 130048   ;;  %v1475_v7 = vld [vmem:[#allocation5 + $0x18] sm:$0xff]  ;;  %s1441_s0 = smov 64   ;;  %s1442_s1 = smov 32  }
  0x1e   :  { %1193 = vmatprep.subr.mxu0 %v41_v1  ;;  %1210 = vmatpush3.msra.mxu1 %v1468_v2  ;;  %v52_v5 = vld [vmem:[#allocation2] sm:$0xff]  ;;  %v53_v6 = vld [vmem:[#allocation2 + $0x8] sm:$0xff]  ;;  %v1480_v8 = vld [vmem:[#allocation5 + $0x10] sm:$0xff]  ;;  %vm194_vm2 = vcmask 261120   ;;  %s1443_s21 = smov [#allocation7]  }
  0x1f   :  { %1194 = vmatpush3.msra.mxu0 %v41_v1  ;;  %1211 = vmatprep.subr.mxu1 %v1439_v0  ;;  %v1506_v10 = vld [vmem:[#allocation5 + $0x30] ss:$0 sm:$0xff]  ;;  %v55_v47 = vld [vmem:[#allocation2 + $0x18] sm:$0xff]  ;;  %v56_v48 = vld [vmem:[#allocation2 + $0x20] sm:$0xff]  ;;  %s1093_s22 = sshll.u32 %s1443_s21, 4  ;;  %s1094_s22 = int_to_ptr.vmem [resolvable:$true] %s1093_s22 }
  0x20   :  { %1195 = vmatprep.subr.mxu0 %v40_v3  ;;  %1212 = vmatpush3.msra.mxu1 %v1471_v4  ;;  %v54_v46 = vld [vmem:[#allocation2 + $0x10] sm:$0xff]  ;;  %v57_v49 = vld [vmem:[#allocation2 + $0x28] sm:$0xff]  ;;  %v59_v51 = vld [vmem:[#allocation2 + $0x38] sm:$0xff]  ;;  %s1409_s23 = scalar_lea.vmem %s1094_s22, 128  ;;  %p1414_p11 = scmp.lt.s32.totalorder %s1094_s22, %s1094_s22 }
  0x21   :  { %1196 = vmatpush3.msra.mxu0 %v40_v3  ;;  %1197 = vmatprep.mubr.msk.f32.mxu0 %vm64_vm1, %v52_v5  ;;  %v58_v50 = vld [vmem:[#allocation2 + $0x30] sm:$0xff]  ;;  %p1410_p10 = scmp.ne.s32.totalorder %s1094_s22, %s1409_s23  ;;  %p1415_p12 = scmp.lt.s32.totalorder %s1409_s23, %s1409_s23 }
  0x22   :  { %1213 = vmatprep.subr.mxu1 %v1439_v0  ;;  %1198 = vmatmul.mubr.msk.f32.vlgmr.msra.gmra.mxu0 %vm64_vm1, %v53_v6 }
  0x23   :  { %1214 = vmatpush3.msra.mxu1 %v1475_v7  ;;  %1231 = vmatprep.subr.mxu0 %v1439_v0  ;;  %p1416_p13 = por %p1415_p12, %p1414_p11 }
  0x24   :  { %1215 = vmatprep.subr.mxu1 %v1439_v0  ;;  %1232 = vmatpush3.msra.mxu0 %v1468_v2 }
  0x25   :  { %1216 = vmatpush3.msra.mxu1 %v1480_v8  ;;  %1233 = vmatprep.subr.mxu0 %v1439_v0  ;;  %p1417_p0 = pnand %p1416_p13, %p1410_p10 }
  0x26   :  { %1218 = vmatmul.mubr.f32.vlgmr.msra.gmra.mxu1 %v1439_v0  ;;  %1220 = vmatprep.subr.mxu1 %v1439_v0 }
  0x27   :  { %1221 = vmatpush3.msra.mxu1 %v1468_v2  ;;  %1228 = vmatprep.mubr.msk.f32.mxu1 %vm1440_vm0, %v1439_v0 }
  0x28   :  { %1222 = vmatprep.subr.mxu1 %v1439_v0  ;;  %1234 = vmatpush3.msra.mxu0 %v1471_v4 }
  0x29   :  { %1223 = vmatpush3.msra.mxu1 %v1471_v4  ;;  %1235 = vmatprep.subr.mxu0 %v1439_v0 }
  0x2a   :  { %1224 = vmatprep.subr.mxu1 %v1439_v0  ;;  %1236 = vmatpush3.msra.mxu0 %v1475_v7 }
  0x2b   :  { %1225 = vmatpush3.msra.mxu1 %v1475_v7  ;;  %1237 = vmatprep.subr.mxu0 %v1439_v0 }
  0x2c   :  { %1226 = vmatprep.subr.mxu1 %v1439_v0  ;;  %1238 = vmatpush3.msra.mxu0 %v1480_v8 }
  0x2d   :  { %1227 = vmatpush3.msra.mxu1 %v1480_v8  ;;  %1253 = vmatprep.subr.mxu0 %v1439_v0 }
  0x2e   :  { %1242 = vmatprep.subr.mxu1 %v1439_v0  ;;  %1200 = vmatprep.mubr.msk.f32.mxu0 %vm64_vm1, %v54_v46 }
  0x2f   :  { %1201 = vmatmul.mubr.msk.f32.gmra.mxu0 %vm64_vm1, %v55_v47 }
  0x30   :  { %1203 = vmatprep.mubr.msk.f32.mxu0 %vm64_vm1, %v56_v48 }
  0x33   :  { %1204 = vmatmul.mubr.msk.f32.gmra.mxu0 %vm64_vm1, %v57_v49 }
  0x34   :  { %1206 = vmatprep.mubr.msk.f32.mxu0 %vm64_vm1, %v58_v50 }
  0x37   :  { %1207 = vmatmul.mubr.msk.f32.gmra.mxu0 %vm64_vm1, %v59_v51 }
  0x38   :  { %1239 = vmatprep.mubr.msk.f32.mxu0 %vm1440_vm0, %v1439_v0 }
  0xe2   :  { %v1199_v9 = vpop.f32.mrf.mxu0 }
  0xe3   :  { %v161_v31 = vadd.f32 %v1199_v9, %v1506_v10 }
  0xe4   :  { %v155_v11 = vpop.f32.mrf.mxu0 }
  0xe5   :  { %v156_v12 = vadd.f32 %v1506_v10, %v155_v11 }
  0xe6   :  { %v264_v13 = vpop.f32.mrf.mxu1 }
  0xe7   :  { %v268_v14 = vadd.f32 %v264_v13, %v156_v12 }
  0xe8   :  { %v1219_v15 = vpop.f32.mrf.mxu1 }
  0xe9   :  { %v1112_v16 = vmul.f32 -1.442695, %v268_v14 }
  0xeb   :  { %1317 = vpow2.f32 %v1112_v16 }
  0xef   :  { %v1202_v56 = vpop.f32.mrf.mxu0 }
  0xf1   :  { %v165_v57 = vpop.f32.mrf.mxu0 }
  0xf2   :  { %v166_v62 = vadd.f32 %v1506_v10, %v165_v57 }
  0xf3   :  { %v1548_v58 = vpop.f32.mrf.mxu0 }
  0xf5   :  { %v1550_v59 = vpop.f32.mrf.mxu0 }
  0xf7   :  { %v1552_v60 = vpop.f32.mrf.mxu0 }
  0xf8   :  { %v1318_v17 = vpop.eup %1317 }
  0xf9   :  { %v272_v18 = vadd.f32 1.0, %v1318_v17  ;;  %v1554_v61 = vpop.f32.mrf.mxu0 }
  0xfb   :  { %1319 = vrcp.f32 %v272_v18 }
 0x108   :  { %v1320_v19 = vpop.eup %1319 }
 0x109   :  { %v275_v20 = vmul.f32 2.0, %v1320_v19  ;;  %v277_v24 = vmul.f32 0.0, %v1320_v19 }
 0x10b   :  { %v1113_v21 = vadd.f32 -1.0, %v275_v20 }
 0x10d   :  { %279 = vrot.lane.b32.xlu0 %v1113_v21, %s1441_s0 }
 0x17f   :  { %v280_v22 = vpop.permute.xlu0 %279 }
 0x180   :  { %v282_v23 = vmul.f32 %v1320_v19, %v280_v22 }
 0x182   :  { %284 = vrot.lane.b32.xlu0 %v282_v23, %s1442_s1  ;;  %v171_v23 = vadd.f32 %v1202_v56, %v1506_v10 }
 0x1f4   :  { %v285_v25 = vpop.permute.xlu0 %284 }
 0x1f5   :  { %v287_v26 = vadd.f32 %v285_v25, %v277_v24 }
 0x1f7   :  { %1321 = vtanh.f32 %v287_v26 }
 0x204   :  { %v1322_v27 = vpop.eup %1321 }
 0x205   :  { %290 = vrot.lane.b32.xlu1 %v1322_v27, %s1441_s0 }
 0x277   :  { %v291_v28 = vpop.permute.xlu1 %290 }
 0x278   :  { %v293_v29 = vmul.f32 %v1320_v19, %v291_v28 }
 0x27a   :  { %295 = vrot.lane.b32.xlu1 %v293_v29, %s1442_s1 }
 0x2ec   :  { %v296_v30 = vpop.permute.xlu1 %295 }
 0x2ed   :  { %1229 = vmatmul.mubr.msk.f32.vlgmr.msra.gmra.mxu1 %vm194_vm2, %v296_v30 }
 0x2ee   :  { %1243 = vmatpush3.msra.mxu1 %v1468_v2  ;;  %1250 = vmatprep.mubr.msk.f32.mxu1 %vm1440_vm0, %v1439_v0 }
 0x2ef   :  { %1244 = vmatprep.subr.mxu1 %v1439_v0 }
 0x2f0   :  { %1245 = vmatpush3.msra.mxu1 %v1471_v4 }
 0x2f1   :  { %1246 = vmatprep.subr.mxu1 %v1439_v0 }
 0x2f2   :  { %1247 = vmatpush3.msra.mxu1 %v1475_v7 }
 0x2f3   :  { %1248 = vmatprep.subr.mxu1 %v1439_v0 }
 0x2f4   :  { %1249 = vmatpush3.msra.mxu1 %v1480_v8 }
 0x2f5   :  { %1264 = vmatprep.subr.mxu1 %v1439_v0 }
 0x3ad   :  { %v365_v32 = vpop.f32.mrf.mxu1 }
 0x3ae   :  { %v369_v33 = vadd.f32 %v365_v32, %v161_v31 }
 0x3af   :  { %v1230_v34 = vpop.f32.mrf.mxu1 }
 0x3b0   :  { %v1115_v35 = vmul.f32 -1.442695, %v369_v33 }
 0x3b2   :  { %1323 = vpow2.f32 %v1115_v35 }
 0x3bf   :  { %v1324_v36 = vpop.eup %1323 }
 0x3c0   :  { %v373_v37 = vadd.f32 1.0, %v1324_v36 }
 0x3c2   :  { %1325 = vrcp.f32 %v373_v37 }
 0x3cf   :  { %v1326_v38 = vpop.eup %1325 }
 0x3d0   :  { %v376_v39 = vmul.f32 2.0, %v1326_v38  ;;  %v378_v43 = vmul.f32 %v1326_v38, %v287_v26 }
 0x3d2   :  { %v1116_v40 = vadd.f32 -1.0, %v376_v39 }
 0x3d4   :  { %380 = vrot.lane.b32.xlu0 %v1116_v40, %s1441_s0 }
 0x446   :  { %v381_v41 = vpop.permute.xlu0 %380 }
 0x447   :  { %v383_v42 = vmul.f32 %v1326_v38, %v381_v41 }
 0x449   :  { %385 = vrot.lane.b32.xlu1 %v383_v42, %s1442_s1  ;;  %v176_v42 = vadd.f32 %v1506_v10, %v1550_v59 }
 0x4bb   :  { %v386_v44 = vpop.permute.xlu1 %385 }
 0x4bc   :  { %v388_v45 = vadd.f32 %v386_v44, %v378_v43 }
 0x4be   :  { %1327 = vtanh.f32 %v388_v45 }
 0x4cb   :  { %v1328_v52 = vpop.eup %1327 }
 0x4cc   :  { %391 = vrot.lane.b32.xlu0 %v1328_v52, %s1441_s0 }
 0x53e   :  { %v392_v53 = vpop.permute.xlu0 %391 }
 0x53f   :  { %v394_v54 = vmul.f32 %v1326_v38, %v392_v53 }
 0x541   :  { %396 = vrot.lane.b32.xlu1 %v394_v54, %s1442_s1 }
 0x5b3   :  { %v397_v55 = vpop.permute.xlu1 %396 }
 0x5b4   :  { %1240 = vmatmul.mubr.msk.f32.vlgmr.msra.gmra.mxu0 %vm194_vm2, %v397_v55 }
 0x5b5   :  { %1254 = vmatpush3.msra.mxu0 %v1468_v2  ;;  %1261 = vmatprep.mubr.msk.f32.mxu0 %vm1440_vm0, %v1439_v0 }
 0x5b6   :  { %1255 = vmatprep.subr.mxu0 %v1439_v0 }
 0x5b7   :  { %1256 = vmatpush3.msra.mxu0 %v1471_v4 }
 0x5b8   :  { %1257 = vmatprep.subr.mxu0 %v1439_v0 }
 0x5b9   :  { %1258 = vmatpush3.msra.mxu0 %v1475_v7 }
 0x5ba   :  { %1259 = vmatprep.subr.mxu0 %v1439_v0 }
 0x5bb   :  { %1260 = vmatpush3.msra.mxu0 %v1480_v8 }
 0x5bc   :  { %1275 = vmatprep.subr.mxu0 %v1439_v0 }
 0x674   :  { %v466_v63 = vpop.f32.mrf.mxu0 }
 0x675   :  { %v470_v1 = vadd.f32 %v466_v63, %v166_v62 }
 0x676   :  { %v1241_v3 = vpop.f32.mrf.mxu0 }
 0x677   :  { %v1118_v5 = vmul.f32 -1.442695, %v470_v1  ;;  %v181_v1 = vadd.f32 %v1548_v58, %v1506_v10 }
 0x679   :  { %1329 = vpow2.f32 %v1118_v5 }
 0x686   :  { %v1330_v6 = vpop.eup %1329 }
 0x687   :  { %v474_v9 = vadd.f32 1.0, %v1330_v6 }
 0x689   :  { %1331 = vrcp.f32 %v474_v9 }
 0x696   :  { %v1332_v11 = vpop.eup %1331 }
 0x697   :  { %v477_v12 = vmul.f32 2.0, %v1332_v11  ;;  %v479_v16 = vmul.f32 %v1332_v11, %v388_v45 }
 0x699   :  { %v1119_v13 = vadd.f32 -1.0, %v477_v12 }
 0x69b   :  { %481 = vrot.lane.b32.xlu0 %v1119_v13, %s1441_s0 }
 0x70d   :  { %v482_v14 = vpop.permute.xlu0 %481 }
 0x70e   :  { %v484_v15 = vmul.f32 %v1332_v11, %v482_v14 }
 0x710   :  { %486 = vrot.lane.b32.xlu1 %v484_v15, %s1442_s1 }
 0x782   :  { %v487_v17 = vpop.permute.xlu1 %486 }
 0x783   :  { %v489_v18 = vadd.f32 %v487_v17, %v479_v16 }
 0x785   :  { %1333 = vtanh.f32 %v489_v18 }
 0x792   :  { %v1334_v19 = vpop.eup %1333 }
 0x793   :  { %492 = vrot.lane.b32.xlu0 %v1334_v19, %s1441_s0 }
 0x805   :  { %v493_v20 = vpop.permute.xlu0 %492 }
 0x806   :  { %v495_v21 = vmul.f32 %v1332_v11, %v493_v20  ;;  %v186_v20 = vadd.f32 %v1506_v10, %v1554_v61 }
 0x808   :  { %497 = vrot.lane.b32.xlu1 %v495_v21, %s1442_s1 }
 0x87a   :  { %v498_v22 = vpop.permute.xlu1 %497 }
 0x87b   :  { %1251 = vmatmul.mubr.msk.f32.vlgmr.msra.gmra.mxu1 %vm194_vm2, %v498_v22 }
 0x87c   :  { %1265 = vmatpush3.msra.mxu1 %v1468_v2  ;;  %1272 = vmatprep.mubr.msk.f32.mxu1 %vm1440_vm0, %v1439_v0 }
 0x87d   :  { %1266 = vmatprep.subr.mxu1 %v1439_v0 }
 0x87e   :  { %1267 = vmatpush3.msra.mxu1 %v1471_v4 }
 0x87f   :  { %1268 = vmatprep.subr.mxu1 %v1439_v0 }
 0x880   :  { %1269 = vmatpush3.msra.mxu1 %v1475_v7 }
 0x881   :  { %1270 = vmatprep.subr.mxu1 %v1439_v0 }
 0x882   :  { %1271 = vmatpush3.msra.mxu1 %v1480_v8 }
 0x883   :  { %1286 = vmatprep.subr.mxu1 %v1439_v0 }
 0x93b   :  { %v567_v24 = vpop.f32.mrf.mxu1 }
 0x93c   :  { %v571_v25 = vadd.f32 %v567_v24, %v171_v23 }
 0x93d   :  { %v1252_v26 = vpop.f32.mrf.mxu1 }
 0x93e   :  { %v1121_v27 = vmul.f32 -1.442695, %v571_v25 }
 0x940   :  { %1335 = vpow2.f32 %v1121_v27 }
 0x94d   :  { %v1336_v28 = vpop.eup %1335 }
 0x94e   :  { %v575_v29 = vadd.f32 1.0, %v1336_v28 }
 0x950   :  { %1337 = vrcp.f32 %v575_v29 }
 0x95d   :  { %v1338_v30 = vpop.eup %1337 }
 0x95e   :  { %v578_v31 = vmul.f32 2.0, %v1338_v30  ;;  %v580_v35 = vmul.f32 %v1338_v30, %v489_v18 }
 0x960   :  { %v1122_v32 = vadd.f32 -1.0, %v578_v31 }
 0x962   :  { %582 = vrot.lane.b32.xlu0 %v1122_v32, %s1441_s0 }
 0x9d4   :  { %v583_v33 = vpop.permute.xlu0 %582 }
 0x9d5   :  { %v585_v34 = vmul.f32 %v1338_v30, %v583_v33 }
 0x9d7   :  { %587 = vrot.lane.b32.xlu1 %v585_v34, %s1442_s1 }
 0xa49   :  { %v588_v36 = vpop.permute.xlu1 %587 }
 0xa4a   :  { %v590_v37 = vadd.f32 %v588_v36, %v580_v35 }
 0xa4c   :  { %1339 = vtanh.f32 %v590_v37 }
 0xa59   :  { %v1340_v38 = vpop.eup %1339 }
 0xa5a   :  { %593 = vrot.lane.b32.xlu0 %v1340_v38, %s1441_s0  ;;  %v191_v38 = vadd.f32 %v1552_v60, %v1506_v10  ;;  %v50_v60 = vld [vmem:[#allocation5 + $0x50] sm:$0xff] }
 0xacc   :  { %v594_v39 = vpop.permute.xlu0 %593 }
 0xacd   :  { %v596_v40 = vmul.f32 %v1338_v30, %v594_v39 }
 0xacf   :  { %598 = vrot.lane.b32.xlu1 %v596_v40, %s1442_s1 }
 0xb41   :  { %v599_v41 = vpop.permute.xlu1 %598 }
 0xb42   :  { %1262 = vmatmul.mubr.msk.f32.vlgmr.msra.gmra.mxu0 %vm194_vm2, %v599_v41 }
 0xb43   :  { %1276 = vmatpush3.msra.mxu0 %v1468_v2  ;;  %1283 = vmatprep.mubr.msk.f32.mxu0 %vm1440_vm0, %v1439_v0 }
 0xb44   :  { %1277 = vmatprep.subr.mxu0 %v1439_v0 }
 0xb45   :  { %1278 = vmatpush3.msra.mxu0 %v1471_v4 }
 0xb46   :  { %1279 = vmatprep.subr.mxu0 %v1439_v0 }
 0xb47   :  { %1280 = vmatpush3.msra.mxu0 %v1475_v7 }
 0xb48   :  { %1281 = vmatprep.subr.mxu0 %v1439_v0 }
 0xb49   :  { %1282 = vmatpush3.msra.mxu0 %v1480_v8 }
 0xb4a   :  { %1297 = vmatprep.subr.mxu0 %v1439_v0 }
 0xc02   :  { %v668_v43 = vpop.f32.mrf.mxu0 }
 0xc03   :  { %v672_v44 = vadd.f32 %v668_v43, %v176_v42 }
 0xc04   :  { %v1263_v45 = vpop.f32.mrf.mxu0 }
 0xc05   :  { %v1124_v46 = vmul.f32 -1.442695, %v672_v44 }
 0xc07   :  { %1341 = vpow2.f32 %v1124_v46 }
 0xc14   :  { %v1342_v47 = vpop.eup %1341 }
 0xc15   :  { %v676_v48 = vadd.f32 1.0, %v1342_v47 }
 0xc17   :  { %1343 = vrcp.f32 %v676_v48 }
 0xc24   :  { %v1344_v49 = vpop.eup %1343 }
 0xc25   :  { %v679_v50 = vmul.f32 2.0, %v1344_v49  ;;  %v681_v54 = vmul.f32 %v1344_v49, %v590_v37 }
 0xc27   :  { %v1125_v51 = vadd.f32 -1.0, %v679_v50 }
 0xc29   :  { %683 = vrot.lane.b32.xlu0 %v1125_v51, %s1441_s0 }
 0xc9b   :  { %v684_v52 = vpop.permute.xlu0 %683 }
 0xc9c   :  { %v686_v53 = vmul.f32 %v1344_v49, %v684_v52  ;;  %v49_v52 = vld [vmem:[#allocation5 + $0x48] sm:$0xff] }
 0xc9e   :  { %688 = vrot.lane.b32.xlu1 %v686_v53, %s1442_s1  ;;  %v48_v53 = vld [vmem:[#allocation5 + $0x40] sm:$0xff] }
 0xd10   :  { %v689_v55 = vpop.permute.xlu1 %688 }
 0xd11   :  { %v691_v56 = vadd.f32 %v689_v55, %v681_v54  ;;  %v47_v54 = vld [vmem:[#allocation5 + $0x38] sm:$0xff] }
 0xd13   :  { %1345 = vtanh.f32 %v691_v56 }
 0xd20   :  { %v1346_v57 = vpop.eup %1345 }
 0xd21   :  { %694 = vrot.lane.b32.xlu0 %v1346_v57, %s1441_s0 }
 0xd93   :  { %v695_v59 = vpop.permute.xlu0 %694 }
 0xd94   :  { %v697_v62 = vmul.f32 %v1344_v49, %v695_v59 }
 0xd96   :  { %699 = vrot.lane.b32.xlu1 %v697_v62, %s1442_s1  ;;  %v1135_v62 = vld [vmem:[#allocation5 + $0x58] ss:$0 sm:$0xff] }
 0xe08   :  { %v700_v63 = vpop.permute.xlu1 %699 }
 0xe09   :  { %1273 = vmatmul.mubr.msk.f32.vlgmr.msra.gmra.mxu1 %vm194_vm2, %v700_v63 }
 0xe0a   :  { %1287 = vmatpush3.msra.mxu1 %v1468_v2  ;;  %1294 = vmatprep.mubr.msk.f32.mxu1 %vm1440_vm0, %v1439_v0 }
 0xe0b   :  { %1288 = vmatprep.subr.mxu1 %v1439_v0 }
 0xe0c   :  { %1289 = vmatpush3.msra.mxu1 %v1471_v4 }
 0xe0d   :  { %1290 = vmatprep.subr.mxu1 %v1439_v0 }
 0xe0e   :  { %1291 = vmatpush3.msra.mxu1 %v1475_v7 }
 0xe0f   :  { %1292 = vmatprep.subr.mxu1 %v1439_v0 }
 0xe10   :  { %1293 = vmatpush3.msra.mxu1 %v1480_v8 }
 0xec9   :  { %v769_v3 = vpop.f32.mrf.mxu1 }
 0xeca   :  { %v773_v2 = vadd.f32 %v769_v3, %v181_v1 }
 0xecb   :  { %v1274_v5 = vpop.f32.mrf.mxu1 }
 0xecc   :  { %v1127_v6 = vmul.f32 -1.442695, %v773_v2 }
 0xece   :  { %1347 = vpow2.f32 %v1127_v6 }
 0xedb   :  { %v1348_v9 = vpop.eup %1347 }
 0xedc   :  { %v777_v11 = vadd.f32 1.0, %v1348_v9 }
 0xede   :  { %1349 = vrcp.f32 %v777_v11 }
 0xeeb   :  { %v1350_v4 = vpop.eup %1349 }
 0xeec   :  { %v780_v12 = vmul.f32 2.0, %v1350_v4  ;;  %v782_v8 = vmul.f32 %v1350_v4, %v691_v56 }
 0xeee   :  { %v1128_v13 = vadd.f32 -1.0, %v780_v12 }
 0xef0   :  { %784 = vrot.lane.b32.xlu0 %v1128_v13, %s1441_s0 }
 0xf62   :  { %v785_v7 = vpop.permute.xlu0 %784 }
 0xf63   :  { %v787_v14 = vmul.f32 %v1350_v4, %v785_v7 }
 0xf65   :  { %789 = vrot.lane.b32.xlu1 %v787_v14, %s1442_s1 }
 0xfd7   :  { %v790_v15 = vpop.permute.xlu1 %789 }
 0xfd8   :  { %v792_v58 = vadd.f32 %v790_v15, %v782_v8 }
 0xfda   :  { %1351 = vtanh.f32 %v792_v58 }
 0xfe7   :  { %v1352_v16 = vpop.eup %1351 }
 0xfe8   :  { %795 = vrot.lane.b32.xlu0 %v1352_v16, %s1441_s0 }
0x105a   :  { %v796_v17 = vpop.permute.xlu0 %795 }
0x105b   :  { %v798_v18 = vmul.f32 %v1350_v4, %v796_v17 }
0x105d   :  { %800 = vrot.lane.b32.xlu1 %v798_v18, %s1442_s1 }
0x10cf   :  { %v801_v19 = vpop.permute.xlu1 %800 }
0x10d0   :  { %1284 = vmatmul.mubr.msk.f32.vlgmr.msra.gmra.mxu0 %vm194_vm2, %v801_v19 }
0x10d1   :  { %1305 = vmatprep.mubr.msk.f32.mxu0 %vm1440_vm0, %v1439_v0  ;;  %1298 = vmatpush3.msra.mxu0 %v50_v60 }
0x10d2   :  { %1299 = vmatprep.subr.mxu0 %v1439_v0 }
0x10d3   :  { %1300 = vmatpush3.msra.mxu0 %v49_v52 }
0x10d4   :  { %1301 = vmatprep.subr.mxu0 %v1439_v0 }
0x10d5   :  { %1302 = vmatpush3.msra.mxu0 %v48_v53 }
0x10d6   :  { %1303 = vmatprep.subr.mxu0 %v1439_v0 }
0x10d7   :  { %1304 = vmatpush3.msra.mxu0 %v47_v54 }
0x1190   :  { %v870_v21 = vpop.f32.mrf.mxu0 }
0x1191   :  { %v874_v22 = vadd.f32 %v870_v21, %v186_v20 }
0x1192   :  { %v1285_v23 = vpop.f32.mrf.mxu0 }
0x1193   :  { %v1130_v24 = vmul.f32 -1.442695, %v874_v22 }
0x1195   :  { %1353 = vpow2.f32 %v1130_v24 }
0x11a2   :  { %v1354_v25 = vpop.eup %1353 }
0x11a3   :  { %v878_v26 = vadd.f32 1.0, %v1354_v25 }
0x11a5   :  { %1355 = vrcp.f32 %v878_v26 }
0x11b2   :  { %v1356_v27 = vpop.eup %1355 }
0x11b3   :  { %v881_v28 = vmul.f32 2.0, %v1356_v27  ;;  %v883_v32 = vmul.f32 %v1356_v27, %v792_v58 }
0x11b5   :  { %v1131_v29 = vadd.f32 -1.0, %v881_v28 }
0x11b7   :  { %885 = vrot.lane.b32.xlu0 %v1131_v29, %s1441_s0 }
0x1229   :  { %v886_v30 = vpop.permute.xlu0 %885 }
0x122a   :  { %v888_v31 = vmul.f32 %v1356_v27, %v886_v30 }
0x122c   :  { %890 = vrot.lane.b32.xlu1 %v888_v31, %s1442_s1 }
0x129e   :  { %v891_v33 = vpop.permute.xlu1 %890 }
0x129f   :  { %v893_v61 = vadd.f32 %v891_v33, %v883_v32 }
0x12a1   :  { %1357 = vtanh.f32 %v893_v61 }
0x12ae   :  { %v1358_v34 = vpop.eup %1357 }
0x12af   :  { %896 = vrot.lane.b32.xlu0 %v1358_v34, %s1441_s0 }
0x1321   :  { %v897_v35 = vpop.permute.xlu0 %896 }
0x1322   :  { %v899_v36 = vmul.f32 %v1356_v27, %v897_v35 }
0x1324   :  { %901 = vrot.lane.b32.xlu1 %v899_v36, %s1442_s1 }
0x1396   :  { %v902_v37 = vpop.permute.xlu1 %901 }
0x1397   :  { %1295 = vmatmul.mubr.msk.f32.vlgmr.msra.gmra.mxu1 %vm194_vm2, %v902_v37 }
0x1457   :  { %v971_v39 = vpop.f32.mrf.mxu1 }
0x1458   :  { %v975_v40 = vadd.f32 %v971_v39, %v191_v38 }
0x1459   :  { %v1296_v41 = vpop.f32.mrf.mxu1 }
0x145a   :  { %v1133_v42 = vmul.f32 -1.442695, %v975_v40 }
0x145c   :  { %1359 = vpow2.f32 %v1133_v42 }
0x1469   :  { %v1360_v43 = vpop.eup %1359 }
0x146a   :  { %v979_v44 = vadd.f32 1.0, %v1360_v43 }
0x146c   :  { %1361 = vrcp.f32 %v979_v44 }
0x1479   :  { %v1362_v45 = vpop.eup %1361 }
0x147a   :  { %v982_v46 = vmul.f32 2.0, %v1362_v45  ;;  %v984_v50 = vmul.f32 %v1362_v45, %v893_v61 }
0x147c   :  { %v1134_v47 = vadd.f32 -1.0, %v982_v46 }
0x147e   :  { %986 = vrot.lane.b32.xlu0 %v1134_v47, %s1441_s0 }
0x14f0   :  { %v987_v48 = vpop.permute.xlu0 %986 }
0x14f1   :  { %v989_v49 = vmul.f32 %v1362_v45, %v987_v48 }
0x14f3   :  { %991 = vrot.lane.b32.xlu1 %v989_v49, %s1442_s1 }
0x1565   :  { %v992_v51 = vpop.permute.xlu1 %991 }
0x1566   :  { %v994_v10 = vadd.f32 %v992_v51, %v984_v50 }
0x1568   :  { %1363 = vtanh.f32 %v994_v10 }
0x1575   :  { %v1364_v55 = vpop.eup %1363 }
0x1576   :  { %997 = vrot.lane.b32.xlu0 %v1364_v55, %s1441_s0 }
0x15e8   :  { %v998_v56 = vpop.permute.xlu0 %997 }
0x15e9   :  { %v1000_v57 = vmul.f32 %v1362_v45, %v998_v56 }
0x15eb   :  { %1006 = vrot.lane.b32.xlu1 %v1000_v57, %s1442_s1 }
0x165d   :  { %v1007_v59 = vpop.permute.xlu1 %1006 }
0x165e   :  { %1306 = vmatmul.mubr.msk.f32.vlgmr.msra.gmra.mxu0 %vm194_vm2, %v1007_v59 }
0x171e   :  { %v1076_v63 = vpop.f32.mrf.mxu0 }
0x171f   :  { %v1077_v1 = vadd.f32 %v1135_v62, %v1076_v63 }
0x1720   :  { %v1307_v3 = vpop.f32.mrf.mxu0 }
0x1721   :  { %v1137_v2 = vmul.f32 -1.442695, %v1077_v1 }
0x1723   :  { %1365 = vpow2.f32 %v1137_v2 }
0x1730   :  { %v1366_v5 = vpop.eup %1365 }
0x1731   :  { %v1083_v6 = vadd.f32 1.0, %v1366_v5 }
0x1733   :  { %1367 = vrcp.f32 %v1083_v6 }
0x1740   :  { %v1368_v0 = vpop.eup %1367 }
0x1741   :  { %1086 = vst [vmem:[#allocation7] sm:$0xff] %v1368_v0 }
0x1742   :  { %1420 = shalt.err (!%p1417_p0)
}
0x1743   :  { %1096 = dma.vmem_to_hbm [thread:$0]  %s1094_s22, 128, %s1635_s2, [#allocation4]  }
0x1744   :  { %1433 = dma.done.wait [#allocation4], 128  }
0x1745   :  { %1434 = vsyncadd [#allocation4], 4294967168 }
0x1746   :  { %1100 = vsyncpa [#allocation3], 1 }
0x1747   :  { %1101 = vsyncpa [#allocation6], 1 }
0x1748   :  { %1102 = vsyncpa [#allocation4], 1 }

</bundles_post_ra>
